<compile_context>
chip_gen: v7x
topology: tpu7x:2x2x1
jax: 0.10.0
libtpu: 0.0.40
codegen_flags: <defaults>
</compile_context>

<pallas_src>
import jax
import jax.numpy as jnp
from jax.experimental import pallas as pl
from jax.experimental.pallas import tpu as pltpu

LANE = 128


def _round_up(x, m):
    return ((x + m - 1) // m) * m


def _pick_tile_b(batch, cap=128):
    """Bounded, 8-aligned batch tile; prefer >=2 grid steps (v7x megacore)."""
    if batch % 8 != 0:
        return batch                       # full-dim block is always legal
    tb = min(batch, cap)
    tb -= tb % 8
    while tb > 8 and batch % tb != 0:
        tb -= 8
    if tb < 8 or batch % tb != 0:
        return batch
    if batch // tb < 2 and tb >= 16 and (tb // 2) % 8 == 0 and batch % (tb // 2) == 0:
        tb //= 2                           # give the second TensorCore work
    return tb


def _pick_tile_k(feat, cap=2048):
    """Contraction (flatten_dim) tile: a multiple of 128 that keeps the fc0
    weight block small enough to double-buffer in VMEM.  Returns
    (tile_k, padded_feat)."""
    cap = max(LANE, (cap // LANE) * LANE)
    if feat <= cap:
        return feat, feat                  # single K step, full-dim block
    tk = cap
    while tk >= LANE and feat % tk != 0:
        tk -= LANE
    if tk >= LANE:
        return tk, feat
    return cap, _round_up(feat, cap)       # no aligned divisor -> zero-pad K


def _mlp_kernel(x_ref, w0_ref, b0_ref, w1_ref, b1_ref, w2_ref, b2_ref,
                o_ref, acc_ref):
    k = pl.program_id(1)

    @pl.when(k == 0)
    def _init():
        acc_ref[...] = jnp.zeros_like(acc_ref)

    # fc0 partial product for this K tile (f32 accumulation in VMEM scratch).
    x = x_ref[...].astype(w0_ref.dtype)
    acc_ref[...] += jnp.dot(x, w0_ref[...], preferred_element_type=jnp.float32)

    @pl.when(k == pl.num_programs(1) - 1)
    def _finalize():
        h0 = jnp.maximum(acc_ref[...] + b0_ref[...], 0.0)            # relu0
        h1 = jnp.dot(h0.astype(w1_ref.dtype), w1_ref[...],
                     preferred_element_type=jnp.float32)
        h1 = jnp.maximum(h1 + b1_ref[...], 0.0)                       # relu1
        logits = jnp.dot(h1.astype(w2_ref.dtype), w2_ref[...],
                         preferred_element_type=jnp.float32) + b2_ref[...]
        # F.normalize(dim=1): padded class columns are exactly zero, so the
        # norm over the lane-dense padded row equals the real norm.
        denom = jnp.maximum(
            jnp.sqrt(jnp.sum(logits * logits, axis=-1, keepdims=True)), 1e-12)
        o_ref[...] = (logits / denom).astype(o_ref.dtype)


def prepare_params(w0, b0, w1, b1, w2, b2, *, weight_dtype=jnp.float32,
                   tile_k_cap=2048):
    """One-time conversion of PyTorch nn.Linear params ([out, in] layout):
    transpose to [in, out], zero-pad every output dim to a multiple of 128,
    zero-pad fc0's input dim to a multiple of tile_k, cast weights to
    `weight_dtype` (biases stay f32)."""
    feat = w0.shape[1]
    h0, h1, ncls = w0.shape[0], w1.shape[0], w2.shape[0]
    h0p, h1p, cp = _round_up(h0, LANE), _round_up(h1, LANE), _round_up(ncls, LANE)
    tile_k, feat_p = _pick_tile_k(feat, tile_k_cap)

    def pad2d(arr, rows, cols, dtype):
        out = jnp.zeros((rows, cols), dtype)
        return out.at[:arr.shape[0], :arr.shape[1]].set(arr.astype(dtype))

    return {
        "w0": pad2d(w0.T, feat_p, h0p, weight_dtype),
        "b0": pad2d(b0.reshape(1, -1), 1, h0p, jnp.float32),
        "w1": pad2d(w1.T, h0p, h1p, weight_dtype),
        "b1": pad2d(b1.reshape(1, -1), 1, h1p, jnp.float32),
        "w2": pad2d(w2.T, h1p, cp, weight_dtype),
        "b2": pad2d(b2.reshape(1, -1), 1, cp, jnp.float32),
        "num_classes": ncls,
        "flatten_dim": feat,
        "padded_flatten": feat_p,
        "tile_k": tile_k,
    }


def sp_mlp_classifier_forward(features, params, *, tile_b=None):
    batch = features.shape[0]
    x = features.reshape(batch, -1)                     # .view(B, -1)
    feat, feat_p = params["flatten_dim"], params["padded_flatten"]
    assert x.shape[1] == feat, "flatten_dim mismatch with prepared params"
    if feat_p != feat:
        x = jnp.pad(x, ((0, 0), (0, feat_p - feat)))

    w0, b0 = params["w0"], params["b0"]
    w1, b1 = params["w1"], params["b1"]
    w2, b2 = params["w2"], params["b2"]
    h0p, h1p, cp = w0.shape[1], w1.shape[1], w2.shape[1]
    tk = params["tile_k"]

    tb = _pick_tile_b(batch) if tile_b is None else tile_b
    assert batch % tb == 0 and (tb == batch or tb % 8 == 0), (
        "tile_b must divide batch and be a multiple of 8 (or equal batch)")

    grid = (batch // tb, feat_p // tk)

    out_padded = pl.pallas_call(
        _mlp_kernel,
        out_shape=jax.ShapeDtypeStruct((batch, cp), features.dtype),
        grid_spec=pltpu.PrefetchScalarGridSpec(
            num_scalar_prefetch=0,
            grid=grid,
            in_specs=[
                pl.BlockSpec((tb, tk), lambda i, k: (i, k)),      # x tile
                pl.BlockSpec((tk, h0p), lambda i, k: (k, 0)),     # fc0 W tile
                pl.BlockSpec((1, h0p), lambda i, k: (0, 0)),      # fc0 bias
                pl.BlockSpec((h0p, h1p), lambda i, k: (0, 0)),    # fc1 W
                pl.BlockSpec((1, h1p), lambda i, k: (0, 0)),      # fc1 bias
                pl.BlockSpec((h1p, cp), lambda i, k: (0, 0)),     # fc2 W
                pl.BlockSpec((1, cp), lambda i, k: (0, 0)),       # fc2 bias
            ],
            out_specs=pl.BlockSpec((tb, cp), lambda i, k: (i, 0)),
            scratch_shapes=[pltpu.VMEM((tb, h0p), jnp.float32)],  # fc0 acc
        ),
        compiler_params=pltpu.CompilerParams(
            dimension_semantics=("parallel", "arbitrary"),
        ),
    )(x, w0, b0, w1, b1, w2, b2)

    return out_padded[:, :params["num_classes"]]


if __name__ == "__main__":
    # Small stand-in shapes consistent with the module: the real classifier
    # flattens [B, 32, 125, 125] (flatten_dim = 500000); here [B, 8, 16, 16]
    # -> flatten_dim = 2048 so the demo is quick.  Structure is identical.
    batch, chans, spatial = 16, 8, 16
    num_classes, hidden0, hidden1 = 5, 128, 64
    flatten_dim = chans * spatial * spatial

    key = jax.random.PRNGKey(0)
    ks = jax.random.split(key, 7)
    features = jax.random.normal(ks[0], (batch, chans, spatial, spatial),
                                 dtype=jnp.float32)

    def linear_init(kw, kb, out_dim, in_dim):
        bound = 1.0 / (in_dim ** 0.5)                 # nn.Linear default init
        w = jax.random.uniform(kw, (out_dim, in_dim), minval=-bound,
                               maxval=bound, dtype=jnp.float32)
        b = jax.random.uniform(kb, (out_dim,), minval=-bound,
                               maxval=bound, dtype=jnp.float32)
        return w, b

    w0, b0 = linear_init(ks[1], ks[2], hidden0, flatten_dim)
    w1, b1 = linear_init(ks[3], ks[4], hidden1, hidden0)
    w2, b2 = linear_init(ks[5], ks[6], num_classes, hidden1)

    xf = features.reshape(batch, -1)

    def reference(x_in, wdt):
        def lin(h, w, b):
            return jnp.dot(h.astype(wdt), w.T.astype(wdt),
                           preferred_element_type=jnp.float32) + b
        h = jnp.maximum(lin(x_in, w0, b0), 0.0)
        h = jnp.maximum(lin(h, w1, b1), 0.0)
        lg = lin(h, w2, b2)
        return lg / jnp.maximum(
            jnp.sqrt(jnp.sum(lg * lg, axis=1, keepdims=True)), 1e-12)

    ref_f32 = reference(xf, jnp.float32)
    ref_bf16 = reference(xf, jnp.bfloat16)

    # f32 weights; tile_k_cap=512 forces a multi-step K reduction, exercising
    # the accumulator path the real 500000-wide flatten_dim needs.
    p_f32 = prepare_params(w0, b0, w1, b1, w2, b2,
                           weight_dtype=jnp.float32, tile_k_cap=512)
    out_f32 = jax.block_until_ready(sp_mlp_classifier_forward(features, p_f32))
    assert out_f32.shape == (batch, num_classes)
    assert jnp.allclose(out_f32, ref_f32, atol=2e-4, rtol=2e-4)

    # bf16 weights (halves the dominant weight HBM stream), f32 accumulation.
    p_bf16 = prepare_params(w0, b0, w1, b1, w2, b2, weight_dtype=jnp.bfloat16)
    out_bf16 = jax.block_until_ready(
        sp_mlp_classifier_forward(features, p_bf16))
    assert out_bf16.shape == (batch, num_classes)
    assert jnp.allclose(out_bf16, ref_bf16, atol=2e-2, rtol=2e-2)

    print("KERNEL_OK")
</pallas_src>

<mosaic_0001>
module attributes {stable_mosaic.version = 11 : i64} {
  func.func @_mlp_kernel(%arg0: i32, %arg1: i32, %arg2: memref<8x512xf32, #tpu.memory_space<vmem>>, %arg3: memref<512x128xf32, #tpu.memory_space<vmem>>, %arg4: memref<1x128xf32, #tpu.memory_space<vmem>>, %arg5: memref<128x128xf32, #tpu.memory_space<vmem>>, %arg6: memref<1x128xf32, #tpu.memory_space<vmem>>, %arg7: memref<128x128xf32, #tpu.memory_space<vmem>>, %arg8: memref<1x128xf32, #tpu.memory_space<vmem>>, %arg9: memref<8x128xf32, #tpu.memory_space<vmem>>, %arg10: memref<8x128xf32, #tpu.memory_space<vmem>>) attributes {dimension_semantics = [#tpu.dimension_semantics<parallel>, #tpu.dimension_semantics<arbitrary>], iteration_bounds = array<i64: 2, 4>, scalar_prefetch = 0 : i64, scratch_operands = 1 : i64, tpu.core_type = #tpu.core_type<tc>, window_params = [{transform_indices = @transform_0, window_bounds = array<i64: 8, 512>}, {transform_indices = @transform_1, window_bounds = array<i64: 512, 128>}, {pipeline_mode = #tpu.pipeline_mode<synchronous>, transform_indices = @transform_2, window_bounds = array<i64: 1, 128>}, {pipeline_mode = #tpu.pipeline_mode<synchronous>, transform_indices = @transform_3, window_bounds = array<i64: 128, 128>}, {pipeline_mode = #tpu.pipeline_mode<synchronous>, transform_indices = @transform_4, window_bounds = array<i64: 1, 128>}, {pipeline_mode = #tpu.pipeline_mode<synchronous>, transform_indices = @transform_5, window_bounds = array<i64: 128, 128>}, {pipeline_mode = #tpu.pipeline_mode<synchronous>, transform_indices = @transform_6, window_bounds = array<i64: 1, 128>}, {transform_indices = @transform_7, window_bounds = array<i64: 8, 128>}]} {
    %c0_i32 = arith.constant 0 : i32
    %0 = arith.cmpi eq, %arg1, %c0_i32 : i32
    %1 = arith.extui %0 : i1 to i32
    %c0_i32_0 = arith.constant 0 : i32
    %2 = arith.cmpi ne, %1, %c0_i32_0 : i32
    scf.if %2 {
      %cst_9 = arith.constant 0.000000e+00 : f32
      %12 = vector.broadcast %cst_9 : f32 to vector<8x128xf32>
      %c0_10 = arith.constant 0 : index
      %c0_11 = arith.constant 0 : index
      %13 = vector.load %arg10[%c0_10, %c0_11] : memref<8x128xf32, #tpu.memory_space<vmem>>, vector<8x128xf32>
      tpu.vector_store %arg10[%c0_10, %c0_11], %12 {strides = array<i32>} : memref<8x128xf32, #tpu.memory_space<vmem>>, vector<8x128xf32>,
    } else {
    }
    %c0 = arith.constant 0 : index
    %c0_1 = arith.constant 0 : index
    %3 = vector.load %arg2[%c0, %c0_1] : memref<8x512xf32, #tpu.memory_space<vmem>>, vector<8x512xf32>
    %c0_2 = arith.constant 0 : index
    %c0_3 = arith.constant 0 : index
    %4 = vector.load %arg10[%c0_2, %c0_3] : memref<8x128xf32, #tpu.memory_space<vmem>>, vector<8x128xf32>
    %c0_4 = arith.constant 0 : index
    %c0_5 = arith.constant 0 : index
    %5 = vector.load %arg3[%c0_4, %c0_5] : memref<512x128xf32, #tpu.memory_space<vmem>>, vector<512x128xf32>
    %cst = arith.constant dense<0.000000e+00> : vector<8x128xf32>
    %6 = tpu.matmul %3, %5, %cst {dimension_numbers = #tpu.dot_dimension_numbers<[1], [0], [0], [1], [0, 0, 1, 1], [], []>} : vector<8x512xf32>, vector<512x128xf32>, vector<8x128xf32> -> vector<8x128xf32>
    %7 = arith.addf %4, %6 : vector<8x128xf32>
    %c0_6 = arith.constant 0 : index
    %c0_7 = arith.constant 0 : index
    %8 = vector.load %arg10[%c0_6, %c0_7] : memref<8x128xf32, #tpu.memory_space<vmem>>, vector<8x128xf32>
    tpu.vector_store %arg10[%c0_6, %c0_7], %7 {strides = array<i32>} : memref<8x128xf32, #tpu.memory_space<vmem>>, vector<8x128xf32>,
    %c3_i32 = arith.constant 3 : i32
    %9 = arith.cmpi eq, %arg1, %c3_i32 : i32
    %10 = arith.extui %9 : i1 to i32
    %c0_i32_8 = arith.constant 0 : i32
    %11 = arith.cmpi ne, %10, %c0_i32_8 : i32
    scf.if %11 {
      %c0_9 = arith.constant 0 : index
      %c0_10 = arith.constant 0 : index
      %12 = vector.load %arg10[%c0_9, %c0_10] : memref<8x128xf32, #tpu.memory_space<vmem>>, vector<8x128xf32>
      %c0_11 = arith.constant 0 : index
      %c0_12 = arith.constant 0 : index
      %13 = vector.load %arg4[%c0_11, %c0_12] : memref<1x128xf32, #tpu.memory_space<vmem>>, vector<1x128xf32>
      %14 = vector.broadcast %13 : vector<1x128xf32> to vector<8x128xf32>
      %15 = arith.addf %12, %14 : vector<8x128xf32>
      %cst_13 = arith.constant 0.000000e+00 : f32
      %16 = vector.broadcast %cst_13 : f32 to vector<8x128xf32>
      %17 = arith.maximumf %15, %16 : vector<8x128xf32>
      %c0_14 = arith.constant 0 : index
      %c0_15 = arith.constant 0 : index
      %18 = vector.load %arg5[%c0_14, %c0_15] : memref<128x128xf32, #tpu.memory_space<vmem>>, vector<128x128xf32>
      %cst_16 = arith.constant dense<0.000000e+00> : vector<8x128xf32>
      %19 = tpu.matmul %17, %18, %cst_16 {dimension_numbers = #tpu.dot_dimension_numbers<[1], [0], [0], [1], [0, 0, 1, 1], [], []>} : vector<8x128xf32>, vector<128x128xf32>, vector<8x128xf32> -> vector<8x128xf32>
      %c0_17 = arith.constant 0 : index
      %c0_18 = arith.constant 0 : index
      %20 = vector.load %arg6[%c0_17, %c0_18] : memref<1x128xf32, #tpu.memory_space<vmem>>, vector<1x128xf32>
      %21 = vector.broadcast %20 : vector<1x128xf32> to vector<8x128xf32>
      %22 = arith.addf %19, %21 : vector<8x128xf32>
      %cst_19 = arith.constant 0.000000e+00 : f32
      %23 = vector.broadcast %cst_19 : f32 to vector<8x128xf32>
      %24 = arith.maximumf %22, %23 : vector<8x128xf32>
      %c0_20 = arith.constant 0 : index
      %c0_21 = arith.constant 0 : index
      %25 = vector.load %arg7[%c0_20, %c0_21] : memref<128x128xf32, #tpu.memory_space<vmem>>, vector<128x128xf32>
      %cst_22 = arith.constant dense<0.000000e+00> : vector<8x128xf32>
      %26 = tpu.matmul %24, %25, %cst_22 {dimension_numbers = #tpu.dot_dimension_numbers<[1], [0], [0], [1], [0, 0, 1, 1], [], []>} : vector<8x128xf32>, vector<128x128xf32>, vector<8x128xf32> -> vector<8x128xf32>
      %c0_23 = arith.constant 0 : index
      %c0_24 = arith.constant 0 : index
      %27 = vector.load %arg8[%c0_23, %c0_24] : memref<1x128xf32, #tpu.memory_space<vmem>>, vector<1x128xf32>
      %28 = vector.broadcast %27 : vector<1x128xf32> to vector<8x128xf32>
      %29 = arith.addf %26, %28 : vector<8x128xf32>
      %30 = arith.mulf %29, %29 : vector<8x128xf32>
      %cst_25 = arith.constant dense<0.000000e+00> : vector<8xf32>
      %31 = vector.multi_reduction <add>, %30, %cst_25 [1] : vector<8x128xf32> to vector<8xf32>
      %32 = vector.shape_cast %31 : vector<8xf32> to vector<8x1xf32>
      %33 = math.sqrt %32 : vector<8x1xf32>
      %cst_26 = arith.constant 9.99999996E-13 : f32
      %34 = vector.broadcast %cst_26 : f32 to vector<8x1xf32>
      %35 = arith.maximumf %33, %34 : vector<8x1xf32>
      %36 = vector.broadcast %35 : vector<8x1xf32> to vector<8x128xf32>
      %37 = arith.divf %29, %36 : vector<8x128xf32>
      %c0_27 = arith.constant 0 : index
      %c0_28 = arith.constant 0 : index
      %38 = vector.load %arg9[%c0_27, %c0_28] : memref<8x128xf32, #tpu.memory_space<vmem>>, vector<8x128xf32>
      tpu.vector_store %arg9[%c0_27, %c0_28], %37 {strides = array<i32>} : memref<8x128xf32, #tpu.memory_space<vmem>>, vector<8x128xf32>,
    } else {
    }
    return
  }
  func.func @transform_0(%arg0: i32, %arg1: i32) -> (i32, i32) {
    %c0_i32 = arith.constant 0 : i32
    return %arg0, %arg1 : i32, i32
  }
  func.func @transform_1(%arg0: i32, %arg1: i32) -> (i32, i32) {
    %c0_i32 = arith.constant 0 : i32
    %c0_i32_0 = arith.constant 0 : i32
    return %arg1, %c0_i32 : i32, i32
  }
  func.func @transform_2(%arg0: i32, %arg1: i32) -> (i32, i32) {
    %c0_i32 = arith.constant 0 : i32
    %c0_i32_0 = arith.constant 0 : i32
    %c0_i32_1 = arith.constant 0 : i32
    return %c0_i32, %c0_i32_0 : i32, i32
  }
  func.func @transform_3(%arg0: i32, %arg1: i32) -> (i32, i32) {
    %c0_i32 = arith.constant 0 : i32
    %c0_i32_0 = arith.constant 0 : i32
    %c0_i32_1 = arith.constant 0 : i32
    return %c0_i32, %c0_i32_0 : i32, i32
  }
  func.func @transform_4(%arg0: i32, %arg1: i32) -> (i32, i32) {
    %c0_i32 = arith.constant 0 : i32
    %c0_i32_0 = arith.constant 0 : i32
    %c0_i32_1 = arith.constant 0 : i32
    return %c0_i32, %c0_i32_0 : i32, i32
  }
  func.func @transform_5(%arg0: i32, %arg1: i32) -> (i32, i32) {
    %c0_i32 = arith.constant 0 : i32
    %c0_i32_0 = arith.constant 0 : i32
    %c0_i32_1 = arith.constant 0 : i32
    return %c0_i32, %c0_i32_0 : i32, i32
  }
  func.func @transform_6(%arg0: i32, %arg1: i32) -> (i32, i32) {
    %c0_i32 = arith.constant 0 : i32
    %c0_i32_0 = arith.constant 0 : i32
    %c0_i32_1 = arith.constant 0 : i32
    return %c0_i32, %c0_i32_0 : i32, i32
  }
  func.func @transform_7(%arg0: i32, %arg1: i32) -> (i32, i32) {
    %c0_i32 = arith.constant 0 : i32
    %c0_i32_0 = arith.constant 0 : i32
    return %arg0, %c0_i32 : i32, i32
  }
}

</mosaic_0001>

<bundles_post_ra>
// kernel: tpu_custom_call.1
= control target key start
LH: loop header
LB: loop body
LE: loop exit
PB: predicated region body
PF: predicated region fallthrough
CT: control target
= control target key end

     0   :  { %s2269_s0 = inlined_call_operand.hbm [shape: f32[16,2048], index: 0, kind: input, shape index: {}]   ;;  %s2270_s1 = inlined_call_operand.hbm [shape: f32[2048,128], index: 1, kind: input, shape index: {}]   ;;  %s2271_s2 = inlined_call_operand.vmem [shape: f32[1,128], index: 2, kind: input, shape index: {}]   ;;  %s2272_s3 = inlined_call_operand.hbm [shape: f32[128,128], index: 3, kind: input, shape index: {}]   ;;  %s2273_s4 = inlined_call_operand.vmem [shape: f32[1,128], index: 4, kind: input, shape index: {}]   ;;  %s2274_s5 = inlined_call_operand.hbm [shape: f32[128,128], index: 5, kind: input, shape index: {}]   ;;  %s2275_s6 = inlined_call_operand.vmem [shape: f32[1,128], index: 6, kind: input, shape index: {}]   ;;  %s2276_s7 = inlined_call_operand.hbm [shape: f32[16,128], index: 7, kind: output, shape index: {}]  }
   0x1   :  { %2291 = sst [smem:[#allocation25_spill]] %s2271_s2 }
   0x2   :  { %2292 = sst [smem:[#allocation26_spill]] %s2272_s3 }
   0x3   :  { %2293 = sst [smem:[#allocation27_spill]] %s2273_s4 }
   0x4   :  { %2294 = sst [smem:[#allocation28_spill]] %s2274_s5 }
   0x5   :  { %2295 = sst [smem:[#allocation29_spill]] %s2275_s6 }
   0x6   :  { %2296 = sst [smem:[#allocation30_spill]] %s2276_s7 }
   0x7   :  { %12 = vsyncpa [#allocation4], 0 }
   0x8   :  { %14 = vsyncpa [#allocation4 + $0x1], 0 }
   0x9   :  { %15 = vsyncpa [#allocation7], 0 }
   0xa   :  { %17 = vsyncpa [#allocation7 + $0x1], 0 }
   0xb   :  { %18 = vsyncpa [#allocation10], 0 }
   0xc   :  { %19 = vsyncpa [#allocation5], 0 }
   0xd   :  { %21 = vsyncpa [#allocation5 + $0x1], 0  ;;  %s1757_s24 = smov 0   ;;  %s1759_s25 = smov 0  }
   0xe   :  { %s1761_s26 = smov 0   ;;  %s1763_s27 = smov 0  }
   0xf   :  { %s1765_s28 = smov 0   ;;  %s1767_s29 = smov 0  }
  0x10   :  { %s1769_s30 = smov 0   ;;  %s1771_s8 = smov 0  }
  0x11   :  { %s1773_s9 = smov 0   ;;  %s1775_s10 = smov 0  }
  0x12   :  { %s1777_s11 = smov 0   ;;  %s1779_s12 = smov 0  }
  0x13   :  { %s1781_s13 = smov 0   ;;  %s1783_s14 = smov 0  }
  0x14 LB: > { %2297 = sst [smem:[#allocation17_spill]] %s1652_s24  ;;  %s1826_s15 = sadd.s32 4294967295, %s1704_s14   ;;  %s1704_s14 = sphi %s1783_s14, %s27_s14   ;;  %s1700_s13 = sphi %s1781_s13, %s2356_s13   ;;  %s1696_s12 = sphi %s1779_s12, %s2355_s12   ;;  %s1692_s11 = sphi %s1777_s11, %s2354_s11   ;;  %s1688_s10 = sphi %s1775_s10, %s2353_s10   ;;  %s1684_s9 = sphi %s1773_s9, %s2352_s9   ;;  %s1680_s8 = sphi %s1771_s8, %s2351_s8   ;;  %s1676_s30 = sphi %s1769_s30, %s2350_s30   ;;  %s1672_s29 = sphi %s1767_s29, %s2349_s29   ;;  %s1668_s28 = sphi %s1765_s28, %s2348_s28   ;;  %s1664_s27 = sphi %s1763_s27, %s2347_s27   ;;  %s1660_s26 = sphi %s1761_s26, %s2346_s26   ;;  %s1656_s25 = sphi %s1759_s25, %s2345_s25   ;;  %s1652_s24 = sphi %s1757_s24, %s2344_s24  }
  0x15   : > { %2298 = sst [smem:[#allocation18_spill]] %s1688_s10  ;;  %s954_s16 = sadd.s32 4294967294, %s1704_s14  }
  0x16   : > { %2299 = sst [smem:[#allocation19_spill]] %s1692_s11  ;;  %p2282_p0 = scmp.eq.s32.totalorder %s1826_s15, 0 }
  0x17   : > { %p87_p1 = scmp.ne.s32.totalorder %s1668_s28, %s1664_s27  ;;  %p215_p2 = scmp.ne.s32.totalorder %s1660_s26, %s1656_s25 }
  0x18   : > { %p216_p3 = scmp.eq.s32.totalorder %s1826_s15, 7  ;;  %p221_p5 = scmp.ne.s32.totalorder %s1656_s25, %s1652_s24 }
  0x19   : > { %p1836_p4 = por %p87_p1, %p2282_p0  ;;  %p222_p7 = scmp.eq.s32.totalorder %s954_s16, 7 }
  0x1a   : > { %p1842_p6 = por %p216_p3, %p215_p2  ;;  %p955_p8 = scmp.ge.s32.totalorder %s1704_s14, 1 }
  0x1b   : > { %s2300_s17 = scalar_select %p1836_p4, 1, 0 }
  0x1c   : > { %s2301_s18 = scalar_select %p1842_p6, 1, 0 }
  0x1d   : > { %p229_p9 = scmp.lt.s32.totalorder %s1704_s14, 9  ;;  %p1848_p10 = por %p222_p7, %p221_p5 }
  0x1e   : > { %2302 = sst [smem:[#allocation20_spill]] %s2301_s18  ;;  %s1706_s21 = smov [#allocation8]  }
  0x1f   : > { %s2303_s19 = scalar_select %p1848_p10, 1, 0 }
  0x20   : > { %p1852_p11 = pnand %p955_p8, %p229_p9  ;;  %s244_s22 = sshll.u32 %s1706_s21, 4  ;;  %s245_s22 = int_to_ptr.vmem [resolvable:$true] %s244_s22 }
  0x21   : > { %2304 = sst [smem:[#allocation21_spill]] %s2303_s19  ;;  %s1707_s27 = smov [#allocation9]  }
  0x22   : > { %s2305_s20 = scalar_select %p1852_p11, 1, 0 }
  0x23   : > { %p1282_p12 = pneg %p1852_p11  ;;  %s260_s16 = sshll.u32 %s1707_s27, 4  ;;  %s1864_s16 = int_to_ptr.vmem [resolvable:$true] %s260_s16 }
  0x24   : > { %s2307_s3 = sld [smem:[#allocation26_spill]] }
  0x25   : > { %p1860_p13 = pnand %p1282_p12, %p2282_p0 }
  0x27   : > { %p1432_p2 = pneg %p1860_p13 }
  0x2a   : > { %s1430_s7 = scalar_lea.hbm %s2307_s3, 2048 }
  0x2b   : > { %p1431_p1 = scmp.ne.s32.totalorder %s2307_s3, %s1430_s7  ;;  %p1437_p7 = scmp.lt.u32.totalorder %s1430_s7, %s2307_s3 }
  0x2d   : > { %p1433_p3 = pnand %p1432_p2, %p1431_p1 }
  0x2f   : > { %p1434_p5 = pneg %p1433_p3 }
  0x31   : > { %p1439_p8 = pnand %p1437_p7, %p1434_p5 }
  0x33   : > { %1442 = shalt.err (!%p1439_p8)
}
  0x34   : > { %s1443_s27 = scalar_lea.vmem %s245_s22, 2048  ;;  %p1451_p10 = scmp.lt.s32.totalorder %s245_s22, %s245_s22 }
  0x35   : > { %p1444_p9 = scmp.ne.s32.totalorder %s245_s22, %s1443_s27  ;;  %p1452_p6 = scmp.lt.s32.totalorder %s1443_s27, %s1443_s27 }
  0x37   : > { %p1446_p12 = pnand %p1444_p9, %p1432_p2  ;;  %p1453_p4 = por %p1452_p6, %p1451_p10 }
  0x39   : > { %p1447_p0 = pneg %p1446_p12 }
  0x3b   : > { %p1454_p11 = pnand %p1453_p4, %p1447_p0 }
  0x3d   : > { %1457 = shalt.err (!%p1454_p11)
}
  0x3e   : > { %s2286_s24 = smov 128   ;;  %s2287_s18 = smov 8  }
  0x3f   : > { %1285 = dma.hbm_to_vmem [thread:$0]  (!%p1860_p13), %s2307_s3, 2048, %s245_s22, [#allocation7], %s2286_s24, %s2286_s24, %s2287_s18  }
  0x40   : > { %s2308_s5 = sld [smem:[#allocation28_spill]] }
  0x46   : > { %s1458_s21 = scalar_lea.hbm %s2308_s5, 2048 }
  0x47   : > { %p1459_p0 = scmp.ne.s32.totalorder %s2308_s5, %s1458_s21  ;;  %p1465_p10 = scmp.lt.u32.totalorder %s1458_s21, %s2308_s5 }
  0x49   : > { %p1461_p4 = pnand %p1459_p0, %p1432_p2 }
  0x4b   : > { %p1462_p6 = pneg %p1461_p4 }
  0x4d   : > { %p1467_p11 = pnand %p1465_p10, %p1462_p6 }
  0x4f   : > { %1470 = shalt.err (!%p1467_p11)
}
  0x50   : > { %s1471_s22 = scalar_lea.vmem %s1864_s16, 2048  ;;  %p1479_p7 = scmp.lt.s32.totalorder %s1864_s16, %s1864_s16 }
  0x51   : > { %p1472_p1 = scmp.ne.s32.totalorder %s1864_s16, %s1471_s22  ;;  %p1480_p8 = scmp.lt.s32.totalorder %s1471_s22, %s1471_s22 }
  0x53   : > { %p1474_p3 = pnand %p1472_p1, %p1432_p2  ;;  %p1481_p9 = por %p1480_p8, %p1479_p7 }
  0x55   : > { %p1475_p5 = pneg %p1474_p3 }
  0x57   : > { %p1482_p12 = pnand %p1481_p9, %p1475_p5 }
  0x59   : > { %1485 = shalt.err (!%p1482_p12)
}
  0x5a   : > { %1288 = dma.hbm_to_vmem [thread:$0]  (!%p1860_p13), %s2308_s5, 2048, %s1864_s16, [#allocation10], %s2286_s24, %s2286_s24, %s2287_s18  }
  0x5b   : > { %s36_s10 = sadd.s32 1, %s1696_s12  ;;  %s39_s23 = sadd.s32 1, %s1700_s13 }
  0x5c   : > { %p37_p2 = scmp.ge.s32.totalorder %s36_s10, 4  ;;  %s48_s6 = sadd.s32 1, %s1684_s9 }
  0x5d   : > { %p55_p0 = scmp.ne.s32.totalorder %s1684_s9, %s1680_s8  ;;  %p56_p4 = scmp.eq.s32.totalorder %s1704_s14, 0 }
  0x5e   : > { %s2358_s10 = smov (%p37_p2, %s36_s10), 0  ;;  %s2360_s23 = smov (!%p37_p2, %s39_s23), %s1700_s13 }
  0x5f   : > { %2309 = sst [smem:[#allocation22_spill]] %s2358_s10  ;;  %s44_s7 = ssub.s32 %s1696_s12, %s2358_s10 }
  0x60   : > { %p41_p13 = scmp.ge.s32.totalorder %s2360_s23, 2  ;;  %p61_p6 = scmp.ne.s32.totalorder %s1680_s8, %s1676_s30 }
  0x61   : > { %p1934_p10 = por %p56_p4, %p55_p0  ;;  %p72_p11 = scmp.eq.s32.totalorder %s44_s7, 0 }
  0x62   : > { %s2362_s23 = smov (%p41_p13, %s2360_s23), 0  ;;  %p2312_p1 = scmp.eq.s32.totalorder %s1826_s15, 0 }
  0x63   : > { %2311 = sst [smem:[#allocation23_spill]] %s2362_s23  ;;  %s74_s19 = sadd.s32 1, %s1672_s29 }
  0x64   : > { %p1942_p3 = por %p2312_p1, %p61_p6  ;;  %s43_s30 = ssub.s32 %s1700_s13, %s2362_s23 }
  0x65   : > { %p81_p5 = scmp.ne.s32.totalorder %s1672_s29, %s1668_s28  ;;  %s45_s21 = sor.u32 %s44_s7, %s43_s30 }
  0x66   : > { %s2313_s11 = scalar_select %p1942_p3, 1, 0 }
  0x67   : > { %p203_p7 = scmp.eq.s32.totalorder %s43_s30, 0  ;;  %p46_p8 = scmp.eq.s32.totalorder %s45_s21, 0 }
  0x68   : > { %p1953_p9 = por %p81_p5, %p56_p4  ;;  %s205_s4 = sadd.s32 1, %s1660_s26 }
  0x69   : > { %s1958_s22 = scalar_select %p72_p11, %s1672_s29, %s74_s19  }
  0x6a   : > { %s1961_s2 = scalar_select %p46_p8, %s1684_s9, %s48_s6  }
  0x6b   : > { %2315 = sst [smem:[#allocation24_spill]] %s1958_s22  ;;  %p1302_p12 = scmp.lt.s32.totalorder %s1704_s14, 8 }
  0x6c   : > { %s1966_s24 = scalar_select %p203_p7, %s1660_s26, %s205_s4  }
  0x6d   : > { %s277_s7 = sand.u32 1, %s1684_s9   ;;  %s960_s30 = sshll.u32 %s1696_s12, 2 }
  0x6e   : > { %s959_s21 = sshll.u32 %s277_s7, 5  ;;  %s961_s18 = sshll.u32 %s1700_s13, 4 }
  0x6f   : > { %s287_s3 = sadd.s32 %s961_s18, %s960_s30  ;;  %s281_s5 = scalar_lea.vmem [#allocation3], %s959_s21 }
  0x70   : > { %s291_s23 = sshll.u32 %s281_s5, 4  ;;  %s962_s10 = sshll.u32 %s287_s3, 7  ;;  %s1971_s23 = int_to_ptr.vmem [resolvable:$true] %s291_s23 }
  0x71   : > { %s1976_s6 = scalar_lea.hbm %s2269_s0, %s962_s10  ;;  %p1982_p2 = pnand %p1302_p12, %p1934_p10 }
  0x72   : > { %p1990_p0 = pnand %p1302_p12, %p1953_p9  ;;  %s298_s5 = sand.u32 1, %s1704_s14  }
  0x73   : > { %s278_s18 = scalar_lea.sflag [#allocation4], %s277_s7  ;;  %s1486_s10 = scalar_lea.hbm %s1976_s6, 512 }
  0x74   : > { %p1487_p4 = scmp.ne.s32.totalorder %s1976_s6, %s1486_s10  ;;  %p1488_p13 = pneg %p1982_p2 }
  0x75   : > { %s1491_s27 = scalar_lea.hbm %s2269_s0, 4096  ;;  %p1492_p11 = scmp.lt.u32.totalorder %s1976_s6, %s2269_s0 }
  0x76   : > { %p1489_p6 = pnand %p1488_p13, %p1487_p4  ;;  %p1493_p1 = scmp.lt.u32.totalorder %s1491_s27, %s1486_s10 }
  0x77   : > { %p1495_p7 = scmp.lt.u32.totalorder %s1486_s10, %s1976_s6 }
  0x78   : > { %p1490_p10 = pneg %p1489_p6  ;;  %p1494_p5 = por %p1493_p1, %p1492_p11 }
  0x7a   : > { %p1496_p8 = por %p1495_p7, %p1494_p5 }
  0x7c   : > { %p1497_p9 = pnand %p1496_p8, %p1490_p10 }
  0x7e   : > { %1500 = shalt.err (!%p1497_p9)
}
  0x7f   : > { %s1501_s7 = scalar_lea.vmem %s1971_s23, 512  ;;  %s1710_s19 = smov [#allocation3]  }
  0x80   : > { %p1502_p12 = scmp.ne.s32.totalorder %s1971_s23, %s1501_s7  ;;  %s1506_s16 = sshll.u32 %s1710_s19, 4  ;;  %s1507_s16 = int_to_ptr.vmem [resolvable:$false] %s1506_s16 }
  0x81   : > { %s1508_s22 = scalar_lea.vmem %s1507_s16, 1024  ;;  %p1509_p3 = scmp.lt.s32.totalorder %s1971_s23, %s1507_s16 }
  0x82   : > { %p1504_p4 = pnand %p1502_p12, %p1488_p13  ;;  %p1510_p11 = scmp.lt.s32.totalorder %s1508_s22, %s1501_s7 }
  0x84   : > { %p1505_p6 = pneg %p1504_p4  ;;  %p1511_p1 = por %p1510_p11, %p1509_p3 }
  0x86   : > { %p1512_p5 = pnand %p1511_p1, %p1505_p6 }
  0x88   : > { %1515 = shalt.err (!%p1512_p5)
}
  0x89   : > { %1292 = dma.hbm_to_vmem [thread:$0]  (!%p1982_p2), %s1976_s6, 512, %s1971_s23, %s278_s18  }
  0x8a   : > { %s300_s10 = sand.u32 1, %s1672_s29   ;;  %s981_s30 = sshll.u32 %s1696_s12, 13 }
  0x8b   : > { %s963_s27 = sshll.u32 %s300_s10, 9  ;;  %s2025_s7 = scalar_lea.hbm %s2270_s1, %s981_s30 }
  0x8c   : > { %s302_s4 = scalar_lea.vmem [#allocation6], %s963_s27  ;;  %s2031_s22 = scalar_lea.sflag [#allocation7], %s298_s5 }
  0x8d   : > { %s309_s16 = sshll.u32 %s302_s4, 4  ;;  %s1516_s23 = scalar_lea.hbm %s2025_s7, 8192  ;;  %s2027_s16 = int_to_ptr.vmem [resolvable:$true] %s309_s16 }
  0x8e   : > { %p1517_p3 = scmp.ne.s32.totalorder %s2025_s7, %s1516_s23  ;;  %p1518_p2 = pneg %p1990_p0 }
  0x8f   : > { %s1521_s10 = scalar_lea.hbm %s2270_s1, 32768  ;;  %p1522_p7 = scmp.lt.u32.totalorder %s2025_s7, %s2270_s1 }
  0x90   : > { %p1519_p13 = pnand %p1518_p2, %p1517_p3  ;;  %p1523_p8 = scmp.lt.u32.totalorder %s1521_s10, %s1516_s23 }
  0x91   : > { %p1525_p12 = scmp.lt.u32.totalorder %s1516_s23, %s2025_s7 }
  0x92   : > { %p1520_p10 = pneg %p1519_p13  ;;  %p1524_p9 = por %p1523_p8, %p1522_p7 }
  0x94   : > { %p1526_p4 = por %p1525_p12, %p1524_p9 }
  0x96   : > { %p1527_p6 = pnand %p1526_p4, %p1520_p10 }
  0x98   : > { %1530 = shalt.err (!%p1527_p6)
}
  0x99   : > { %s1531_s5 = scalar_lea.vmem %s2027_s16, 8192  ;;  %s1711_s21 = smov [#allocation6]  }
  0x9a   : > { %p1532_p11 = scmp.ne.s32.totalorder %s2027_s16, %s1531_s5  ;;  %s1536_s19 = sshll.u32 %s1711_s21, 4  ;;  %s1537_s19 = int_to_ptr.vmem [resolvable:$false] %s1536_s19 }
  0x9b   : > { %s1538_s4 = scalar_lea.vmem %s1537_s19, 16384  ;;  %p1539_p3 = scmp.lt.s32.totalorder %s2027_s16, %s1537_s19 }
  0x9c   : > { %p1534_p1 = pnand %p1532_p11, %p1518_p2  ;;  %p1540_p13 = scmp.lt.s32.totalorder %s1538_s4, %s1531_s5 }
  0x9e   : > { %p1535_p5 = pneg %p1534_p1  ;;  %p1541_p7 = por %p1540_p13, %p1539_p3 }
  0xa0   : > { %p1542_p8 = pnand %p1541_p7, %p1535_p5 }
  0xa2   : > { %1545 = shalt.err (!%p1542_p8)
}
  0xa3   : > { %s2318_s23 = smov 8   ;;  %s2319_s6 = smov 128  }
  0xa4   : > { %1295 = dma.hbm_to_vmem [thread:$0]  (!%p1990_p0), %s2025_s7, 8192, %s2027_s16, %s2031_s22, %s2319_s6, %s2319_s6, %s2318_s23  }
  0xa5   : > { %p2320_p2 = scmp.ne.s32.totalorder %s2305_s20, 0 }
  0xa6   : > { %s323_s18 = sand.u32 (!%p2320_p2), 1, %s1680_s8   ;;  %p2321_p10 = scmp.ne.s32.totalorder (!%p2320_p2), %s2313_s11, 0 }
  0xa7   : > { %321 = sbr.rel (%p2320_p2) target bundleno = 1101 (0x44d), region = 48  ;;  %s967_s10 = sshll.u32 (!%p2320_p2), %s323_s18, 5 }
  0xa8   : > { %s324_s30 = scalar_lea.sflag (!%p2320_p2), [#allocation4], %s323_s18  ;;  %s2065_s27 = scalar_lea.vmem (!%p2320_p2), [#allocation3], %s967_s10 }
  0xae   : > { %1631 = dma.done.wait (%p2321_p10), %s324_s30, 512  }
  0xaf   : > { %1633 = vsyncadd (%p2321_p10), %s324_s30, 4294966784  ;;  %s332_s3 = sand.u32 1, %s1826_s15   ;;  %s334_s7 = sand.u32 1, %s1668_s28  }
  0xb0   : > { %s968_s16 = sshll.u32 %s334_s7, 9  ;;  %s333_s20 = scalar_lea.sflag [#allocation7], %s332_s3 }
  0xb1   : > { %s2073_s22 = scalar_lea.vmem [#allocation6], %s968_s16  ;;  %p2322_p0 = scmp.ne.s32.totalorder %s2300_s17, 0 }
  0xb3   : > { %1635 = dma.done.wait (%p2322_p0), %s333_s20, 8192  }
  0xb4   : > { %1637 = vsyncadd (%p2322_p0), %s333_s20, 4294959104  ;;  %p2323_p9 = scmp.eq.s32.totalorder %s1826_s15, 0 }
  0xb6   : > { %1639 = dma.done.wait (%p2323_p9), [#allocation7], 2048   ;;  %p2324_p12 = pmov %p2323_p9 }
  0xb7   : > { %p2325_p4 = pmov %p2323_p9 }
  0xb8   : > { %1641 = vsyncadd (%p2324_p12), [#allocation7], 4294965248 }
  0xb9   : > { %1643 = dma.done.wait (%p2325_p4), [#allocation10], 2048   ;;  %p2326_p6 = pmov %p2325_p4 }
  0xba   : > { %s377_s11 = sand.u32 1, %s1656_s25   ;;  %s2327_s21 = sld [smem:[#allocation18_spill]] }
  0xbb   : > { %1645 = vsyncadd (%p2326_p6), [#allocation10], 4294965248  ;;  %s2090_s5 = sshll.u32 %s377_s11, 3 }
  0xbc   : > { %s379_s17 = scalar_lea.vmem [#allocation11], %s2090_s5 }
  0xc0   : > { %p972_p11 = scmp.ne.s32.totalorder %s2327_s21, 0 }
  0xc1   : > { %v1712_v0 = vmov (!%p972_p11), 0.0  }
  0xc2   : > { %385 = sbr.rel (%p972_p11) target bundleno = 201 (0xc9), region = 68  ;;  %386 = vst [vmem:[#allocation2] sm:$0xff] (!%p972_p11), %v1712_v0 }
  0xc9 PF: > { %v408_v1 = vld [vmem:[%s2073_s22 + $0x80] sm:$0xff]  ;;  %v409_v2 = vld [vmem:[%s2073_s22 + $0x88] sm:$0xff]  ;;  %v410_v12 = vld [vmem:[%s2073_s22 + $0x90] sm:$0xff]  ;;  %s2328_s15 = sld [smem:[#allocation18_spill]] }
  0xca   : > { %v440_v3 = vld [vmem:[%s2073_s22 + $0x180] sm:$0xff]  ;;  %v1156_v4 = vpack.c.bf16 %v409_v2, %v408_v1  ;;  %v441_v5 = vld [vmem:[%s2073_s22 + $0x188] sm:$0xff]  ;;  %v411_v14 = vld [vmem:[%s2073_s22 + $0x98] sm:$0xff] }
  0xcb   : > { %v392_v6 = vld [vmem:[%s2073_s22] sm:$0xff]  ;;  %v393_v7 = vld [vmem:[%s2073_s22 + $0x8] sm:$0xff]  ;;  %v1188_v8 = vpack.c.bf16 %v441_v5, %v440_v3  ;;  %v442_v15 = vld [vmem:[%s2073_s22 + $0x190] sm:$0xff]  ;;  %v1160_v17 = vpack.c.bf16 %v411_v14, %v410_v12 }
  0xcc   : > { %v1158_v9 = vpack.c.bf16 %v393_v7, %v392_v6  ;;  %v424_v10 = vld [vmem:[%s2073_s22 + $0x100] sm:$0xff]  ;;  %v425_v11 = vld [vmem:[%s2073_s22 + $0x108] sm:$0xff]  ;;  %1157 = vmatprep.subr.bf16.mxu0 %v1156_v4  ;;  %v443_v16 = vld [vmem:[%s2073_s22 + $0x198] sm:$0xff] }
  0xcd   : > { %v1190_v13 = vpack.c.bf16 %v425_v11, %v424_v10  ;;  %1189 = vmatprep.subr.bf16.mxu1 %v1188_v8  ;;  %v1192_v18 = vpack.c.bf16 %v443_v16, %v442_v15  ;;  %v394_v19 = vld [vmem:[%s2073_s22 + $0x10] sm:$0xff]  ;;  %v395_v20 = vld [vmem:[%s2073_s22 + $0x18] sm:$0xff]  ;;  %v412_v24 = vld [vmem:[%s2073_s22 + $0xa0] sm:$0xff] }
  0xce   : > { %1159 = vmatpush3.bf16.msra.mxu0 %v1158_v9  ;;  %v426_v21 = vld [vmem:[%s2073_s22 + $0x110] sm:$0xff]  ;;  %v1162_v22 = vpack.c.bf16 %v395_v20, %v394_v19  ;;  %v427_v23 = vld [vmem:[%s2073_s22 + $0x118] sm:$0xff]  ;;  %v413_v25 = vld [vmem:[%s2073_s22 + $0xa8] sm:$0xff] }
  0xcf   : > { %1191 = vmatpush3.bf16.msra.mxu1 %v1190_v13  ;;  %1161 = vmatprep.subr.bf16.mxu0 %v1160_v17  ;;  %v1194_v26 = vpack.c.bf16 %v427_v23, %v426_v21  ;;  %v1164_v27 = vpack.c.bf16 %v413_v25, %v412_v24  ;;  %v444_v28 = vld [vmem:[%s2073_s22 + $0x1a0] sm:$0xff]  ;;  %v445_v29 = vld [vmem:[%s2073_s22 + $0x1a8] sm:$0xff]  ;;  %v414_v36 = vld [vmem:[%s2073_s22 + $0xb0] sm:$0xff]  ;;  %p973_p1 = scmp.ne.s32.totalorder %s2328_s15, 3 }
  0xd0   : > { %1193 = vmatprep.subr.bf16.mxu1 %v1192_v18  ;;  %v396_v30 = vld [vmem:[%s2073_s22 + $0x20] sm:$0xff]  ;;  %v1196_v31 = vpack.c.bf16 %v445_v29, %v444_v28  ;;  %v397_v32 = vld [vmem:[%s2073_s22 + $0x28] sm:$0xff]  ;;  %v415_v37 = vld [vmem:[%s2073_s22 + $0xb8] sm:$0xff]  ;;  %vm1714_vm0 = vmmov (!%p973_p1), 0   ;;  %s2329_s23 = sld [smem:[#allocation25_spill]] (!%p973_p1)  ;;  %s2330_s10 = sld [smem:[#allocation27_spill]] (!%p973_p1) }
  0xd1   : > { %v428_v33 = vld [vmem:[%s2073_s22 + $0x120] sm:$0xff]  ;;  %v429_v34 = vld [vmem:[%s2073_s22 + $0x128] sm:$0xff]  ;;  %v1166_v35 = vpack.c.bf16 %v397_v32, %v396_v30  ;;  %v446_v38 = vld [vmem:[%s2073_s22 + $0x1b0] sm:$0xff]  ;;  %v1168_v40 = vpack.c.bf16 %v415_v37, %v414_v36  ;;  %s2331_s3 = sld [smem:[#allocation29_spill]] (!%p973_p1) }
  0xd2   : > { %1163 = vmatpush3.bf16.msra.mxu0 %v1162_v22  ;;  %v1198_v39 = vpack.c.bf16 %v429_v34, %v428_v33  ;;  %v447_v41 = vld [vmem:[%s2073_s22 + $0x1b8] sm:$0xff]  ;;  %v398_v42 = vld [vmem:[%s2073_s22 + $0x30] sm:$0xff]  ;;  %v416_v47 = vld [vmem:[%s2073_s22 + $0xc0] sm:$0xff] }
  0xd3   : > { %1195 = vmatpush3.bf16.msra.mxu1 %v1194_v26  ;;  %1165 = vmatprep.subr.bf16.mxu0 %v1164_v27  ;;  %v399_v43 = vld [vmem:[%s2073_s22 + $0x38] sm:$0xff]  ;;  %v1200_v44 = vpack.c.bf16 %v447_v41, %v446_v38  ;;  %v430_v45 = vld [vmem:[%s2073_s22 + $0x130] sm:$0xff]  ;;  %v417_v48 = vld [vmem:[%s2073_s22 + $0xc8] sm:$0xff] }
  0xd4   : > { %1197 = vmatprep.subr.bf16.mxu1 %v1196_v31  ;;  %v431_v46 = vld [vmem:[%s2073_s22 + $0x138] sm:$0xff]  ;;  %v448_v49 = vld [vmem:[%s2073_s22 + $0x1c0] sm:$0xff]  ;;  %v449_v50 = vld [vmem:[%s2073_s22 + $0x1c8] sm:$0xff]  ;;  %v1170_v51 = vpack.c.bf16 %v399_v43, %v398_v42  ;;  %v1172_v53 = vpack.c.bf16 %v417_v48, %v416_v47 }
  0xd5   : > { %v1202_v52 = vpack.c.bf16 %v431_v46, %v430_v45  ;;  %v400_v54 = vld [vmem:[%s2073_s22 + $0x40] sm:$0xff]  ;;  %v401_v55 = vld [vmem:[%s2073_s22 + $0x48] sm:$0xff]  ;;  %v1204_v57 = vpack.c.bf16 %v449_v50, %v448_v49  ;;  %v418_v59 = vld [vmem:[%s2073_s22 + $0xd0] sm:$0xff]  ;;  %v1713_v49 = vmov (!%p973_p1), 0.0|0.0  }
  0xd6   : > { %1167 = vmatpush3.bf16.msra.mxu0 %v1166_v35  ;;  %v432_v56 = vld [vmem:[%s2073_s22 + $0x140] sm:$0xff]  ;;  %v433_v58 = vld [vmem:[%s2073_s22 + $0x148] sm:$0xff]  ;;  %v419_v60 = vld [vmem:[%s2073_s22 + $0xd8] sm:$0xff]  ;;  %v1174_v63 = vpack.c.bf16 %v401_v55, %v400_v54 }
  0xd7   : > { %1199 = vmatpush3.bf16.msra.mxu1 %v1198_v39  ;;  %1169 = vmatprep.subr.bf16.mxu0 %v1168_v40  ;;  %v450_v61 = vld [vmem:[%s2073_s22 + $0x1d0] sm:$0xff]  ;;  %v451_v62 = vld [vmem:[%s2073_s22 + $0x1d8] sm:$0xff]  ;;  %v1206_v0 = vpack.c.bf16 %v433_v58, %v432_v56  ;;  %v1176_v1 = vpack.c.bf16 %v419_v60, %v418_v59  ;;  %v420_v7 = vld [vmem:[%s2073_s22 + $0xe0] sm:$0xff] }
  0xd8   : > { %1201 = vmatprep.subr.bf16.mxu1 %v1200_v44  ;;  %v402_v2 = vld [vmem:[%s2073_s22 + $0x50] sm:$0xff]  ;;  %v403_v3 = vld [vmem:[%s2073_s22 + $0x58] sm:$0xff]  ;;  %v1208_v5 = vpack.c.bf16 %v451_v62, %v450_v61  ;;  %v421_v8 = vld [vmem:[%s2073_s22 + $0xe8] sm:$0xff] }
  0xd9   : > { %v434_v4 = vld [vmem:[%s2073_s22 + $0x150] sm:$0xff]  ;;  %v435_v6 = vld [vmem:[%s2073_s22 + $0x158] sm:$0xff]  ;;  %v452_v9 = vld [vmem:[%s2073_s22 + $0x1e0] sm:$0xff]  ;;  %v1178_v11 = vpack.c.bf16 %v403_v3, %v402_v2  ;;  %v1180_v15 = vpack.c.bf16 %v421_v8, %v420_v7 }
  0xda   : > { %1171 = vmatpush3.bf16.msra.mxu0 %v1170_v51  ;;  %v453_v10 = vld [vmem:[%s2073_s22 + $0x1e8] sm:$0xff]  ;;  %v404_v12 = vld [vmem:[%s2073_s22 + $0x60] sm:$0xff]  ;;  %v1210_v14 = vpack.c.bf16 %v435_v6, %v434_v4  ;;  %v390_v18 = vld [vmem:[%s2065_s27 + $0x18] sm:$0xff] }
  0xdb   : > { %1203 = vmatpush3.bf16.msra.mxu1 %v1202_v52  ;;  %1173 = vmatprep.subr.bf16.mxu0 %v1172_v53  ;;  %v405_v13 = vld [vmem:[%s2073_s22 + $0x68] sm:$0xff]  ;;  %v436_v16 = vld [vmem:[%s2073_s22 + $0x160] sm:$0xff]  ;;  %v1212_v19 = vpack.c.bf16 %v453_v10, %v452_v9  ;;  %v422_v21 = vld [vmem:[%s2073_s22 + $0xf0] sm:$0xff]  ;;  %v1715_v52 = vmov (!%p973_p1), 0.0  }
  0xdc   : > { %1205 = vmatprep.subr.bf16.mxu1 %v1204_v57  ;;  %v388_v17 = vld [vmem:[%s2065_s27 + $0x8] sm:$0xff]  ;;  %v423_v22 = vld [vmem:[%s2073_s22 + $0xf8] sm:$0xff]  ;;  %v454_v23 = vld [vmem:[%s2073_s22 + $0x1f0] sm:$0xff]  ;;  %590 = vmatprep.mubr.f32.mxu1 %v390_v18  ;;  %v1182_v25 = vpack.c.bf16 %v405_v13, %v404_v12 }
  0xdd   : > { %v437_v20 = vld [vmem:[%s2073_s22 + $0x168] sm:$0xff]  ;;  %520 = vmatprep.mubr.f32.mxu0 %v388_v17  ;;  %v455_v24 = vld [vmem:[%s2073_s22 + $0x1f8] sm:$0xff]  ;;  %v1184_v27 = vpack.c.bf16 %v423_v22, %v422_v21  ;;  %v406_v28 = vld [vmem:[%s2073_s22 + $0x70] sm:$0xff] }
  0xde   : > { %1175 = vmatpush3.bf16.msra.mxu0 %v1174_v63  ;;  %v1214_v26 = vpack.c.bf16 %v437_v20, %v436_v16  ;;  %v407_v29 = vld [vmem:[%s2073_s22 + $0x78] sm:$0xff]  ;;  %v1216_v30 = vpack.c.bf16 %v455_v24, %v454_v23  ;;  %v438_v31 = vld [vmem:[%s2073_s22 + $0x170] sm:$0xff]  ;;  %v387_v35 = vld [vmem:[%s2065_s27] sm:$0xff] }
  0xdf   : > { %1207 = vmatpush3.bf16.msra.mxu1 %v1206_v0  ;;  %1177 = vmatprep.subr.bf16.mxu0 %v1176_v1  ;;  %v439_v32 = vld [vmem:[%s2073_s22 + $0x178] sm:$0xff]  ;;  %v1186_v33 = vpack.c.bf16 %v407_v29, %v406_v28  ;;  %v389_v36 = vld [vmem:[%s2065_s27 + $0x10] sm:$0xff]  ;;  %v612_v46 = vld [vmem:[#allocation8] sm:$0xff] (!%p973_p1) }
  0xe0   : > { %1209 = vmatprep.subr.bf16.mxu1 %v1208_v5  ;;  %v1218_v34 = vpack.c.bf16 %v439_v32, %v438_v31  ;;  %v391_v43 = vld [vmem:[#allocation2] sm:$0xff]  ;;  %v613_v47 = vld [vmem:[#allocation8 + $0x8] sm:$0xff] (!%p973_p1)  ;;  %v614_v48 = vld [vmem:[#allocation8 + $0x10] sm:$0xff] (!%p973_p1) }
  0xe1   : > { %v1221_v50 = vpack.c.bf16 (!%p973_p1), %v613_v47, %v612_v46  ;;  %v615_v51 = vld [vmem:[#allocation8 + $0x18] sm:$0xff] (!%p973_p1)  ;;  %v616_v54 = vld [vmem:[#allocation8 + $0x20] sm:$0xff] (!%p973_p1)  ;;  %v617_v55 = vld [vmem:[#allocation8 + $0x28] sm:$0xff] (!%p973_p1) }
  0xe2   : > { %1179 = vmatpush3.bf16.msra.mxu0 %v1178_v11  ;;  %v1224_v53 = vpack.c.bf16 (!%p973_p1), %v615_v51, %v614_v48  ;;  %v706_v56 = vld [vmem:[#allocation9] sm:$0xff] (!%p973_p1)  ;;  %v707_v57 = vld [vmem:[#allocation9 + $0x8] sm:$0xff] (!%p973_p1)  ;;  %v708_v58 = vld [vmem:[#allocation9 + $0x10] sm:$0xff] (!%p973_p1)  ;;  %v1227_v59 = vpack.c.bf16 (!%p973_p1), %v617_v55, %v616_v54 }
  0xe3   : > { %1211 = vmatpush3.bf16.msra.mxu1 %v1210_v14  ;;  %1181 = vmatprep.subr.bf16.mxu0 %v1180_v15  ;;  %v1245_v60 = vpack.c.bf16 (!%p973_p1), %v707_v57, %v706_v56  ;;  %v709_v61 = vld [vmem:[#allocation9 + $0x18] sm:$0xff] (!%p973_p1)  ;;  %v618_v62 = vld [vmem:[#allocation8 + $0x30] sm:$0xff] (!%p973_p1)  ;;  %v710_v1 = vld [vmem:[#allocation9 + $0x20] sm:$0xff] (!%p973_p1) }
  0xe4   : > { %1213 = vmatprep.subr.bf16.mxu1 %v1212_v19  ;;  %v619_v63 = vld [vmem:[#allocation8 + $0x38] sm:$0xff] (!%p973_p1)  ;;  %v1248_v0 = vpack.c.bf16 (!%p973_p1), %v709_v61, %v708_v58  ;;  %v711_v2 = vld [vmem:[#allocation9 + $0x28] sm:$0xff] (!%p973_p1)  ;;  %v620_v4 = vld [vmem:[#allocation8 + $0x40] sm:$0xff] (!%p973_p1) }
  0xe5   : > { %v1230_v3 = vpack.c.bf16 (!%p973_p1), %v619_v63, %v618_v62  ;;  %v621_v5 = vld [vmem:[#allocation8 + $0x48] sm:$0xff] (!%p973_p1)  ;;  %v1251_v6 = vpack.c.bf16 (!%p973_p1), %v711_v2, %v710_v1  ;;  %v712_v7 = vld [vmem:[#allocation9 + $0x30] sm:$0xff] (!%p973_p1)  ;;  %v713_v8 = vld [vmem:[#allocation9 + $0x38] sm:$0xff] (!%p973_p1) }
  0xe6   : > { %1183 = vmatpush3.bf16.msra.mxu0 %v1182_v25  ;;  %v1233_v9 = vpack.c.bf16 (!%p973_p1), %v621_v5, %v620_v4  ;;  %v622_v10 = vld [vmem:[#allocation8 + $0x50] sm:$0xff] (!%p973_p1)  ;;  %v623_v11 = vld [vmem:[#allocation8 + $0x58] sm:$0xff] (!%p973_p1)  ;;  %v1254_v12 = vpack.c.bf16 (!%p973_p1), %v713_v8, %v712_v7  ;;  %v714_v13 = vld [vmem:[#allocation9 + $0x40] sm:$0xff] (!%p973_p1) }
  0xe7   : > { %1215 = vmatpush3.bf16.msra.mxu1 %v1214_v26  ;;  %1185 = vmatprep.subr.bf16.mxu0 %v1184_v27  ;;  %v715_v14 = vld [vmem:[#allocation9 + $0x48] sm:$0xff] (!%p973_p1)  ;;  %v1236_v15 = vpack.c.bf16 (!%p973_p1), %v623_v11, %v622_v10  ;;  %v624_v16 = vld [vmem:[#allocation8 + $0x60] sm:$0xff] (!%p973_p1)  ;;  %v716_v19 = vld [vmem:[#allocation9 + $0x50] sm:$0xff] (!%p973_p1) }
  0xe8   : > { %1217 = vmatprep.subr.bf16.mxu1 %v1216_v30  ;;  %v625_v17 = vld [vmem:[#allocation8 + $0x68] sm:$0xff] (!%p973_p1)  ;;  %v1257_v18 = vpack.c.bf16 (!%p973_p1), %v715_v14, %v714_v13  ;;  %v717_v20 = vld [vmem:[#allocation9 + $0x58] sm:$0xff] (!%p973_p1)  ;;  %v626_v24 = vld [vmem:[#allocation8 + $0x70] sm:$0xff] (!%p973_p1) }
  0xe9   : > { %v1239_v21 = vpack.c.bf16 (!%p973_p1), %v625_v17, %v624_v16  ;;  %v974_v23 = vld [vmem:[%s2329_s23] ss:$0 sm:$0xff] (!%p973_p1)  ;;  %v1260_v26 = vpack.c.bf16 (!%p973_p1), %v717_v20, %v716_v19  ;;  %v718_v28 = vld [vmem:[#allocation9 + $0x60] sm:$0xff] (!%p973_p1)  ;;  %v719_v29 = vld [vmem:[#allocation9 + $0x68] sm:$0xff] (!%p973_p1) }
  0xea   : > { %1187 = vmatpush3.bf16.msra.mxu0 %v1186_v33  ;;  %v627_v25 = vld [vmem:[#allocation8 + $0x78] sm:$0xff] (!%p973_p1)  ;;  %v1263_v31 = vpack.c.bf16 (!%p973_p1), %v719_v29, %v718_v28  ;;  %v720_v33 = vld [vmem:[#allocation9 + $0x70] sm:$0xff] (!%p973_p1) }
  0xeb   : > { %1219 = vmatpush3.bf16.msra.mxu1 %v1218_v34  ;;  %1220 = vmatprep.subr.bf16.mxu0 (!%p973_p1), %v1713_v49  ;;  %v1242_v30 = vpack.c.bf16 (!%p973_p1), %v627_v25, %v626_v24  ;;  %v721_v34 = vld [vmem:[#allocation9 + $0x78] sm:$0xff] (!%p973_p1) }
  0xec   : > { %1244 = vmatprep.subr.bf16.mxu1 (!%p973_p1), %v1713_v49 }
  0xed   : > { %521 = vmatmul.mubr.f32.vlgmr.msra.gmra.mrb[0].mxu0 %v387_v35  ;;  %v1266_v35 = vpack.c.bf16 (!%p973_p1), %v721_v34, %v720_v33 }
  0xee   : > { %591 = vmatmul.mubr.f32.vlgmr.msra.gmra.mrb[0].mxu1 %v389_v36  ;;  %1118 = vmatprep.mubr.msk.f32.mxu0 (!%p973_p1), %vm1714_vm0, %v1715_v52  ;;  %v975_v36 = vld [vmem:[%s2330_s10] ss:$0 sm:$0xff] (!%p973_p1) }
  0xef   : > { %1153 = vmatprep.mubr.msk.f32.mxu1 (!%p973_p1), %vm1714_vm0, %v1715_v52  ;;  %1222 = vmatpush3.bf16.msra.mxu0 (!%p973_p1), %v1221_v50 }
  0xf0   : > { %1223 = vmatprep.subr.bf16.mxu0 (!%p973_p1), %v1713_v49  ;;  %1246 = vmatpush3.bf16.msra.mxu1 (!%p973_p1), %v1245_v60 }
  0xf1   : > { %1247 = vmatprep.subr.bf16.mxu1 (!%p973_p1), %v1713_v49 }
  0xf3   : > { %1225 = vmatpush3.bf16.msra.mxu0 (!%p973_p1), %v1224_v53 }
  0xf4   : > { %1226 = vmatprep.subr.bf16.mxu0 (!%p973_p1), %v1713_v49  ;;  %1249 = vmatpush3.bf16.msra.mxu1 (!%p973_p1), %v1248_v0 }
  0xf5   : > { %1250 = vmatprep.subr.bf16.mxu1 (!%p973_p1), %v1713_v49 }
  0xf7   : > { %1228 = vmatpush3.bf16.msra.mxu0 (!%p973_p1), %v1227_v59 }
  0xf8   : > { %1229 = vmatprep.subr.bf16.mxu0 (!%p973_p1), %v1713_v49  ;;  %1252 = vmatpush3.bf16.msra.mxu1 (!%p973_p1), %v1251_v6 }
  0xf9   : > { %1253 = vmatprep.subr.bf16.mxu1 (!%p973_p1), %v1713_v49 }
  0xfb   : > { %1231 = vmatpush3.bf16.msra.mxu0 (!%p973_p1), %v1230_v3 }
  0xfc   : > { %1232 = vmatprep.subr.bf16.mxu0 (!%p973_p1), %v1713_v49  ;;  %1255 = vmatpush3.bf16.msra.mxu1 (!%p973_p1), %v1254_v12 }
  0xfd   : > { %1256 = vmatprep.subr.bf16.mxu1 (!%p973_p1), %v1713_v49 }
  0xff   : > { %1234 = vmatpush3.bf16.msra.mxu0 (!%p973_p1), %v1233_v9 }
 0x100   : > { %1235 = vmatprep.subr.bf16.mxu0 (!%p973_p1), %v1713_v49  ;;  %1258 = vmatpush3.bf16.msra.mxu1 (!%p973_p1), %v1257_v18 }
 0x101   : > { %1259 = vmatprep.subr.bf16.mxu1 (!%p973_p1), %v1713_v49 }
 0x103   : > { %1237 = vmatpush3.bf16.msra.mxu0 (!%p973_p1), %v1236_v15 }
 0x104   : > { %1238 = vmatprep.subr.bf16.mxu0 (!%p973_p1), %v1713_v49  ;;  %1261 = vmatpush3.bf16.msra.mxu1 (!%p973_p1), %v1260_v26 }
 0x105   : > { %1262 = vmatprep.subr.bf16.mxu1 (!%p973_p1), %v1713_v49 }
 0x107   : > { %1240 = vmatpush3.bf16.msra.mxu0 (!%p973_p1), %v1239_v21 }
 0x108   : > { %1241 = vmatprep.subr.bf16.mxu0 (!%p973_p1), %v1713_v49  ;;  %1264 = vmatpush3.bf16.msra.mxu1 (!%p973_p1), %v1263_v31 }
 0x109   : > { %1265 = vmatprep.subr.bf16.mxu1 (!%p973_p1), %v1713_v49 }
 0x10b   : > { %1243 = vmatpush3.bf16.msra.mxu0 (!%p973_p1), %v1242_v30 }
 0x10c   : > { %1267 = vmatpush3.bf16.msra.mxu1 (!%p973_p1), %v1266_v35 }
 0x1c0   : > { %v1014_v37 = vpop.f32.mrb[0].mxu0 }
 0x1c1   : > { %v1049_v38 = vpop.f32.mrb[0].mxu1  ;;  %v1015_v39 = vpop.f32.mrb[1].mxu0 }
 0x1c2   : > { %v1016_v40 = vadd.f32 %v1015_v39, %v1014_v37  ;;  %v1050_v41 = vpop.f32.mrb[1].mxu1 }
 0x1c3   : > { %v1051_v42 = vadd.f32 %v1050_v41, %v1049_v38  ;;  %601 = sbr.rel (%p973_p1) target bundleno = 1074 (0x432), region = 72  ;;  %v976_v41 = vld [vmem:[%s2331_s3] ss:$0 sm:$0xff] (!%p973_p1) }
 0x1c5   : > { %v593_v44 = vadd.f32 %v1051_v42, %v1016_v40 }
 0x1c7   : > { %v596_v45 = vadd.f32 %v593_v44, %v391_v43 }
 0x1c9   : > { %597 = vst [vmem:[#allocation2] sm:$0xff] %v596_v45 }
 0x1d0   : > { %v602_v22 = vld [vmem:[#allocation2] sm:$0xff] }
 0x1d1   : > { %v610_v27 = vadd.f32 %v974_v23, %v602_v22 }
 0x1d3   : > { %v611_v32 = vmax.f32 %v610_v27, 0.0 }
 0x1d5   : > { %1119 = vmatmul.mubr.f32.vlgmr.msra.gmra.mrb[0].mxu0 %v611_v32 }
 0x2a8   : > { %v701_v37 = vpop.f32.mrb[0].mxu0 }
 0x2a9   : > { %v702_v38 = vadd.f32 %v975_v36, %v701_v37  ;;  %v1120_v39 = vpop.f32.mrb[1].mxu0 }
 0x2ab   : > { %v705_v40 = vmax.f32 %v702_v38, 0.0 }
 0x2ad   : > { %1154 = vmatmul.mubr.f32.vlgmr.msra.gmra.mrb[0].mxu1 %v705_v40 }
 0x380   : > { %v795_v42 = vpop.f32.mrb[0].mxu1 }
 0x381   : > { %v796_v43 = vadd.f32 %v976_v41, %v795_v42  ;;  %v1155_v44 = vpop.f32.mrb[1].mxu1 }
 0x383   : > { %v799_v45 = vmul.f32 %v796_v43, %v796_v43 }
 0x385   : > { %800 = vadd.xlane.f32.xlu0 %v799_v45 }
 0x412   : > { %v801_v46 = vpop.xlane.xlu0 %800 }
 0x413   : > { %1426 = vrsqrt.f32 %v801_v46  ;;  %vm804_vm1 = vcmp.eq.f32.partialorder %v801_v46, inf  ;;  %v807_v49 = vand.u32 2147483648, %v801_v46  ;;  %vm806_vm2 = vcmp.eq.f32.partialorder %v801_v46, 0.0 }
 0x41d   : > { %v1427_v47 = vpop.eup %1426 }
 0x41e   : > { %v803_v48 = vmul.f32 %v1427_v47, %v801_v46 }
 0x420   : > { %v805_v50 = vsel %vm804_vm1, %v801_v46, %v803_v48 }
 0x421   : > { %v808_v51 = vsel %vm806_vm2, %v807_v49, %v805_v50 }
 0x422   : > { %v809_v52 = vmax.f32 %v808_v51, 1e-12 }
 0x424   : > { %1428 = vrcp.f32 %v809_v52 }
 0x42e   : > { %v1429_v53 = vpop.eup %1428 }
 0x42f   : > { %v811_v54 = vmul.f32 %v1429_v53, %v796_v43 }
 0x431   : > { %812 = vst [vmem:[%s379_s17] sm:$0xff] %v811_v54 }
 0x432 PF: > { %s2332_s7 = sld [smem:[#allocation19_spill]]  ;;  %s2333_s16 = sld [smem:[#allocation20_spill]] }
 0x433   : > { %s2334_s15 = sld [smem:[#allocation30_spill]]  ;;  %s827_s4 = sshll.u32 %s379_s17, 4  ;;  %s828_s4 = int_to_ptr.vmem [resolvable:$true] %s827_s4 }
 0x434   : > { %s814_s23 = scalar_lea.sflag [#allocation5], %s377_s11  ;;  %s1546_s6 = scalar_lea.vmem %s828_s4, 128 }
 0x435   : > { %p1547_p5 = scmp.ne.s32.totalorder %s828_s4, %s1546_s6  ;;  %s1716_s18 = smov [#allocation11]  }
 0x436   : > { %s1550_s10 = sshll.u32 %s1716_s18, 4  ;;  %s1551_s10 = int_to_ptr.vmem [resolvable:$false] %s1550_s10 }
 0x437   : > { %s1552_s30 = scalar_lea.vmem %s1551_s10, 256  ;;  %p1553_p8 = scmp.lt.s32.totalorder %s828_s4, %s1551_s10 }
 0x438   : > { %s978_s20 = sshll.u32 %s2332_s7, 7  ;;  %p2335_p3 = scmp.ne.s32.totalorder %s2333_s16, 0 }
 0x439   : > { %s2194_s19 = scalar_lea.hbm %s2334_s15, %s978_s20  ;;  %p1554_p2 = scmp.lt.s32.totalorder %s1552_s30, %s1546_s6 }
 0x43a   : > { %p1548_p13 = pnand %p1547_p5, %p2335_p3 }
 0x43b   : > { %p1555_p10 = por %p1554_p2, %p1553_p8 }
 0x43c   : > { %p1549_p7 = pneg %p1548_p13 }
 0x43e   : > { %p1556_p0 = pnand %p1555_p10, %p1549_p7 }
 0x440   : > { %1559 = shalt.err (!%p1556_p0)
}
 0x441   : > { %s1560_s11 = scalar_lea.hbm %s2194_s19, 128  ;;  %s1564_s27 = scalar_lea.hbm %s2334_s15, 256 }
 0x442   : > { %p1561_p9 = scmp.ne.s32.totalorder %s2194_s19, %s1560_s11  ;;  %p1565_p6 = scmp.lt.u32.totalorder %s2194_s19, %s2334_s15 }
 0x443   : > { %p1566_p11 = scmp.lt.u32.totalorder %s1564_s27, %s1560_s11  ;;  %p1568_p5 = scmp.lt.u32.totalorder %s1560_s11, %s2194_s19 }
 0x444   : > { %p1562_p12 = pnand %p1561_p9, %p2335_p3 }
 0x445   : > { %p1567_p1 = por %p1566_p11, %p1565_p6 }
 0x446   : > { %p1563_p4 = pneg %p1562_p12 }
 0x447   : > { %p1569_p13 = por %p1568_p5, %p1567_p1 }
 0x449   : > { %p1570_p7 = pnand %p1569_p13, %p1563_p4 }
 0x44b   : > { %1573 = shalt.err (!%p1570_p7)
}
 0x44c   : > { %1280 = dma.vmem_to_hbm [thread:$0]  (%p2335_p3), %s828_s4, 128, %s2194_s19, %s814_s23  }
 0x44d PF: > { %s2336_s20 = sld [smem:[#allocation17_spill]]  ;;  %s2337_s22 = sld [smem:[#allocation21_spill]] }
 0x44e   : > { %p1305_p8 = scmp.ge.s32.totalorder %s1704_s14, 2 }
 0x453   : > { %s839_s21 = sand.u32 1, %s2336_s20   ;;  %p2338_p2 = scmp.ne.s32.totalorder %s2337_s22, 0 }
 0x454   : > { %s840_s6 = scalar_lea.sflag [#allocation5], %s839_s21 }
 0x455   : > { %p1297_p10 = pnand %p1305_p8, %p2338_p2 }
 0x457   : > { %1647 = dma.done.wait (!%p1297_p10), %s840_s6, 128  }
 0x458   : > { %1649 = vsyncadd (!%p1297_p10), %s840_s6, 4294967168  ;;  %s27_s14 = sadd.s32 1, %s1704_s14   ;;  %s2340_s16 = smov %s1966_s24 }
 0x459   : > { %p2222_p0 = scmp.ge.s32.totalorder %s27_s14, 10   ;;  %s2341_s19 = sld [smem:[#allocation24_spill]] }
 0x45a   : > { %s2342_s4 = sld [smem:[#allocation22_spill]]  ;;  %s2343_s23 = sld [smem:[#allocation23_spill]] }
 0x45b   : > { %s2344_s24 = smov %s1656_s25  ;;  %s2345_s25 = smov %s1660_s26 }
 0x45c   : > { %s2346_s26 = smov %s2340_s16  ;;  %s2347_s27 = smov %s1668_s28 }
 0x45d   : > { %s2348_s28 = smov %s1672_s29  ;;  %s2350_s30 = smov %s1680_s8 }
 0x45e   : > { %s2351_s8 = smov %s1684_s9  ;;  %s2352_s9 = smov %s1961_s2 }
 0x45f   : > { %s2349_s29 = smov %s2341_s19  ;;  %s2353_s10 = smov %s1696_s12 }
 0x460   : > { %s2354_s11 = smov %s1700_s13  ;;  %s2355_s12 = smov %s2342_s4 }
 0x461   : > { %s2356_s13 = smov %s2343_s23  ;;  %26 = sbr.rel (!%p2222_p0) target bundleno = 20 (0x14), region = 122 }
 0x468   :  { %845 = vsyncpa [#allocation4], 1 }
 0x469   :  { %847 = vsyncpa [#allocation4 + $0x1], 1 }
 0x46a   :  { %848 = vsyncpa [#allocation7], 1 }
 0x46b   :  { %850 = vsyncpa [#allocation7 + $0x1], 1 }
 0x46c   :  { %851 = vsyncpa [#allocation10], 1 }
 0x46d   :  { %852 = vsyncpa [#allocation5], 1 }
 0x46e   :  { %854 = vsyncpa [#allocation5 + $0x1], 1 }

</bundles_post_ra>
